<compile_context>
chip_gen: v6e
topology: v6e:2x2x1
jax: 0.10.0
libtpu: 0.0.40
codegen_flags: <defaults>
</compile_context>

<pallas_src>
import jax
import jax.numpy as jnp
from jax.experimental import pallas as pl
from jax.experimental.pallas import tpu as pltpu


def _leaky_relu(x, slope=0.001):
    return jnp.where(x > 0, x, slope * x)


def generator_kernel(x_ref,
                     w0_ref, b0_ref,
                     w1_ref, b1_ref,
                     w2_ref, b2_ref,
                     w3t_ref, b3_ref,
                     o_ref):
    x = x_ref[...]                                             # (TB, 2)

    # hidden0: Linear(2, 16) + LeakyReLU -- K=2, do it on the VPU (no MXU pass)
    h = (x[:, 0:1] * w0_ref[0:1, :]
         + x[:, 1:2] * w0_ref[1:2, :]
         + b0_ref[...])                                        # (TB, 16)
    h = _leaky_relu(h)

    # hidden1: Linear(16, 32) + LeakyReLU -- MXU
    h = jnp.dot(h, w1_ref[...], preferred_element_type=jnp.float32) + b1_ref[...]
    h = _leaky_relu(h)                                         # (TB, 32)

    # hidden2: Linear(32, 64) + LeakyReLU -- MXU
    h = jnp.dot(h, w2_ref[...], preferred_element_type=jnp.float32) + b2_ref[...]
    h = _leaky_relu(h)                                         # (TB, 64)

    # out: Linear(64, 2) + Tanh -- N=2, use lane-reductions (XLU) instead of MXU.
    # w3t_ref is the transposed weight, shape (2, 64).
    y0 = jnp.sum(h * w3t_ref[0:1, :], axis=-1, keepdims=True)  # (TB, 1)
    y1 = jnp.sum(h * w3t_ref[1:2, :], axis=-1, keepdims=True)  # (TB, 1)
    col = jax.lax.broadcasted_iota(jnp.int32, (h.shape[0], 2), 1)
    y = jnp.where(col == 0, y0, y1) + b3_ref[...]              # (TB, 2)
    o_ref[...] = jnp.tanh(y).astype(o_ref.dtype)


def generator_forward(x, params, tile_b=1024):
    """x: (B, 2) float32.  params: list of (W, b) with W as (in, out)."""
    B, n_in = x.shape
    n_out = params[-1][0].shape[1]

    # Pick a batch tile: multiple of 8 (f32 sublane), capped at tile_b.
    padded_min = ((B + 7) // 8) * 8
    tb = min(int(tile_b), padded_min)
    tb = max(8, (tb // 8) * 8)
    grid_b = pl.cdiv(B, tb)
    padded_B = grid_b * tb
    if padded_B != B:
        x = jnp.pad(x, ((0, padded_B - B), (0, 0)))

    (w0, b0), (w1, b1), (w2, b2), (w3, b3) = params
    w3t = w3.T  # (2, 64): lets the kernel do per-output-row broadcasts w/o transpose

    flat = [x, w0, b0, w1, b1, w2, b2, w3t, b3]

    in_specs = [pl.BlockSpec((tb, n_in), lambda i: (i, 0))]     # streamed x tile
    for arr in flat[1:]:
        # Resident weights/biases: full-array block, constant index map.
        in_specs.append(pl.BlockSpec(arr.shape, lambda i: (0, 0)))

    out_specs = pl.BlockSpec((tb, n_out), lambda i: (i, 0))

    # VMEM budget: resident params (<64 KiB) + a few lane-padded activation
    # tiles + double-buffered x/out tiles + headroom.
    tile_act_bytes = tb * 128 * 4
    vmem_limit = int(min(max(8 * tile_act_bytes + (2 << 20), 4 << 20), 32 << 20))

    out = pl.pallas_call(
        generator_kernel,
        out_shape=jax.ShapeDtypeStruct((padded_B, n_out), jnp.float32),
        grid=(grid_b,),
        in_specs=in_specs,
        out_specs=out_specs,
        compiler_params=pltpu.CompilerParams(
            dimension_semantics=("parallel",),
            vmem_limit_bytes=vmem_limit,
        ),
    )(*flat)

    return out[:B]


def init_params(key):
    """Deterministic init mimicking PyTorch's default Linear init:
    U(-1/sqrt(fan_in), 1/sqrt(fan_in)) for both weight and bias."""
    dims = [(2, 16), (16, 32), (32, 64), (64, 2)]
    params = []
    for (fan_in, fan_out) in dims:
        key, kw, kb = jax.random.split(key, 3)
        bound = 1.0 / jnp.sqrt(float(fan_in))
        w = jax.random.uniform(kw, (fan_in, fan_out), jnp.float32,
                               minval=-bound, maxval=bound)
        b = jax.random.uniform(kb, (1, fan_out), jnp.float32,
                               minval=-bound, maxval=bound)
        params.append((w, b))
    return params


def reference_forward(x, params):
    """Plain-JAX reference for sanity checking."""
    h = x
    for i, (w, b) in enumerate(params):
        h = h @ w + b
        if i < len(params) - 1:
            h = jnp.where(h > 0, h, 0.001 * h)
        else:
            h = jnp.tanh(h)
    return h


if __name__ == "__main__":
    key = jax.random.PRNGKey(0)
    key, kx = jax.random.split(key)

    # Small demo shapes: B=60 is NOT a tile multiple (exercises padding) and
    # tile_b=32 forces a 2-step batch grid.
    batch = 60
    x = jax.random.normal(kx, (batch, 2), jnp.float32)  # n_features = 2
    params = init_params(key)

    out = generator_forward(x, params, tile_b=32)
    out = jax.block_until_ready(out)

    ref = reference_forward(x, params)
    assert out.shape == (batch, 2)
    assert jnp.allclose(out, ref, atol=1e-5, rtol=1e-5), \
        float(jnp.max(jnp.abs(out - ref)))

    # Also check the single-tile path (B=8 -> tile_b clamps to 8, grid=1).
    key, kx2 = jax.random.split(key)
    x2 = jax.random.normal(kx2, (8, 2), jnp.float32)
    out2 = jax.block_until_ready(generator_forward(x2, params))
    assert jnp.allclose(out2, reference_forward(x2, params), atol=1e-5, rtol=1e-5)

    print("KERNEL_OK")
</pallas_src>

<mosaic_0001>
module attributes {stable_mosaic.version = 11 : i64} {
  func.func @generator_kernel(%arg0: i32, %arg1: memref<32x2xf32, #tpu.memory_space<vmem>>, %arg2: memref<2x16xf32, #tpu.memory_space<vmem>>, %arg3: memref<1x16xf32, #tpu.memory_space<vmem>>, %arg4: memref<16x32xf32, #tpu.memory_space<vmem>>, %arg5: memref<1x32xf32, #tpu.memory_space<vmem>>, %arg6: memref<32x64xf32, #tpu.memory_space<vmem>>, %arg7: memref<1x64xf32, #tpu.memory_space<vmem>>, %arg8: memref<2x64xf32, #tpu.memory_space<vmem>>, %arg9: memref<1x2xf32, #tpu.memory_space<vmem>>, %arg10: memref<32x2xf32, #tpu.memory_space<vmem>>) attributes {dimension_semantics = [#tpu.dimension_semantics<parallel>], iteration_bounds = array<i64: 2>, scalar_prefetch = 0 : i64, scratch_operands = 0 : i64, tpu.core_type = #tpu.core_type<tc>, window_params = [{transform_indices = @transform_0, window_bounds = array<i64: 32, 2>}, {pipeline_mode = #tpu.pipeline_mode<synchronous>, transform_indices = @transform_1, window_bounds = array<i64: 2, 16>}, {pipeline_mode = #tpu.pipeline_mode<synchronous>, transform_indices = @transform_2, window_bounds = array<i64: 1, 16>}, {pipeline_mode = #tpu.pipeline_mode<synchronous>, transform_indices = @transform_3, window_bounds = array<i64: 16, 32>}, {pipeline_mode = #tpu.pipeline_mode<synchronous>, transform_indices = @transform_4, window_bounds = array<i64: 1, 32>}, {pipeline_mode = #tpu.pipeline_mode<synchronous>, transform_indices = @transform_5, window_bounds = array<i64: 32, 64>}, {pipeline_mode = #tpu.pipeline_mode<synchronous>, transform_indices = @transform_6, window_bounds = array<i64: 1, 64>}, {pipeline_mode = #tpu.pipeline_mode<synchronous>, transform_indices = @transform_7, window_bounds = array<i64: 2, 64>}, {pipeline_mode = #tpu.pipeline_mode<synchronous>, transform_indices = @transform_8, window_bounds = array<i64: 1, 2>}, {transform_indices = @transform_9, window_bounds = array<i64: 32, 2>}]} {
    %c0 = arith.constant 0 : index
    %c0_0 = arith.constant 0 : index
    %0 = vector.load %arg1[%c0, %c0_0] : memref<32x2xf32, #tpu.memory_space<vmem>>, vector<32x2xf32>
    %1 = vector.extract_strided_slice %0 {offsets = [0, 0], sizes = [32, 1], strides = [1, 1]} : vector<32x2xf32> to vector<32x1xf32>
    %c0_1 = arith.constant 0 : index
    %c0_2 = arith.constant 0 : index
    %2 = vector.load %arg2[%c0_1, %c0_2] : memref<2x16xf32, #tpu.memory_space<vmem>>, vector<1x16xf32>
    %3 = vector.broadcast %1 : vector<32x1xf32> to vector<32x16xf32>
    %4 = vector.broadcast %2 : vector<1x16xf32> to vector<32x16xf32>
    %5 = arith.mulf %3, %4 : vector<32x16xf32>
    %6 = vector.extract_strided_slice %0 {offsets = [0, 1], sizes = [32, 1], strides = [1, 1]} : vector<32x2xf32> to vector<32x1xf32>
    %c1 = arith.constant 1 : index
    %c0_3 = arith.constant 0 : index
    %7 = vector.load %arg2[%c1, %c0_3] : memref<2x16xf32, #tpu.memory_space<vmem>>, vector<1x16xf32>
    %8 = vector.broadcast %6 : vector<32x1xf32> to vector<32x16xf32>
    %9 = vector.broadcast %7 : vector<1x16xf32> to vector<32x16xf32>
    %10 = arith.mulf %8, %9 : vector<32x16xf32>
    %11 = arith.addf %5, %10 : vector<32x16xf32>
    %c0_4 = arith.constant 0 : index
    %c0_5 = arith.constant 0 : index
    %12 = vector.load %arg3[%c0_4, %c0_5] : memref<1x16xf32, #tpu.memory_space<vmem>>, vector<1x16xf32>
    %13 = vector.broadcast %12 : vector<1x16xf32> to vector<32x16xf32>
    %14 = arith.addf %11, %13 : vector<32x16xf32>
    %cst = arith.constant 0.000000e+00 : f32
    %15 = vector.broadcast %cst : f32 to vector<32x16xf32>
    %16 = arith.cmpf ogt, %14, %15 : vector<32x16xf32>
    %cst_6 = arith.constant 1.000000e-03 : f32
    %17 = vector.broadcast %cst_6 : f32 to vector<32x16xf32>
    %18 = arith.mulf %17, %14 : vector<32x16xf32>
    %19 = arith.select %16, %14, %18 : vector<32x16xi1>, vector<32x16xf32>
    %c0_7 = arith.constant 0 : index
    %c0_8 = arith.constant 0 : index
    %20 = vector.load %arg4[%c0_7, %c0_8] : memref<16x32xf32, #tpu.memory_space<vmem>>, vector<16x32xf32>
    %cst_9 = arith.constant dense<0.000000e+00> : vector<32x32xf32>
    %21 = tpu.matmul %19, %20, %cst_9 {dimension_numbers = #tpu.dot_dimension_numbers<[1], [0], [0], [1], [0, 0, 1, 1], [], []>} : vector<32x16xf32>, vector<16x32xf32>, vector<32x32xf32> -> vector<32x32xf32>
    %c0_10 = arith.constant 0 : index
    %c0_11 = arith.constant 0 : index
    %22 = vector.load %arg5[%c0_10, %c0_11] : memref<1x32xf32, #tpu.memory_space<vmem>>, vector<1x32xf32>
    %23 = vector.broadcast %22 : vector<1x32xf32> to vector<32x32xf32>
    %24 = arith.addf %21, %23 : vector<32x32xf32>
    %cst_12 = arith.constant 0.000000e+00 : f32
    %25 = vector.broadcast %cst_12 : f32 to vector<32x32xf32>
    %26 = arith.cmpf ogt, %24, %25 : vector<32x32xf32>
    %cst_13 = arith.constant 1.000000e-03 : f32
    %27 = vector.broadcast %cst_13 : f32 to vector<32x32xf32>
    %28 = arith.mulf %27, %24 : vector<32x32xf32>
    %29 = arith.select %26, %24, %28 : vector<32x32xi1>, vector<32x32xf32>
    %c0_14 = arith.constant 0 : index
    %c0_15 = arith.constant 0 : index
    %30 = vector.load %arg6[%c0_14, %c0_15] : memref<32x64xf32, #tpu.memory_space<vmem>>, vector<32x64xf32>
    %cst_16 = arith.constant dense<0.000000e+00> : vector<32x64xf32>
    %31 = tpu.matmul %29, %30, %cst_16 {dimension_numbers = #tpu.dot_dimension_numbers<[1], [0], [0], [1], [0, 0, 1, 1], [], []>} : vector<32x32xf32>, vector<32x64xf32>, vector<32x64xf32> -> vector<32x64xf32>
    %c0_17 = arith.constant 0 : index
    %c0_18 = arith.constant 0 : index
    %32 = vector.load %arg7[%c0_17, %c0_18] : memref<1x64xf32, #tpu.memory_space<vmem>>, vector<1x64xf32>
    %33 = vector.broadcast %32 : vector<1x64xf32> to vector<32x64xf32>
    %34 = arith.addf %31, %33 : vector<32x64xf32>
    %cst_19 = arith.constant 0.000000e+00 : f32
    %35 = vector.broadcast %cst_19 : f32 to vector<32x64xf32>
    %36 = arith.cmpf ogt, %34, %35 : vector<32x64xf32>
    %cst_20 = arith.constant 1.000000e-03 : f32
    %37 = vector.broadcast %cst_20 : f32 to vector<32x64xf32>
    %38 = arith.mulf %37, %34 : vector<32x64xf32>
    %39 = arith.select %36, %34, %38 : vector<32x64xi1>, vector<32x64xf32>
    %c0_21 = arith.constant 0 : index
    %c0_22 = arith.constant 0 : index
    %40 = vector.load %arg8[%c0_21, %c0_22] : memref<2x64xf32, #tpu.memory_space<vmem>>, vector<1x64xf32>
    %41 = vector.broadcast %40 : vector<1x64xf32> to vector<32x64xf32>
    %42 = arith.mulf %39, %41 : vector<32x64xf32>
    %cst_23 = arith.constant dense<0.000000e+00> : vector<32xf32>
    %43 = vector.multi_reduction <add>, %42, %cst_23 [1] : vector<32x64xf32> to vector<32xf32>
    %44 = vector.shape_cast %43 : vector<32xf32> to vector<32x1xf32>
    %c1_24 = arith.constant 1 : index
    %c0_25 = arith.constant 0 : index
    %45 = vector.load %arg8[%c1_24, %c0_25] : memref<2x64xf32, #tpu.memory_space<vmem>>, vector<1x64xf32>
    %46 = vector.broadcast %45 : vector<1x64xf32> to vector<32x64xf32>
    %47 = arith.mulf %39, %46 : vector<32x64xf32>
    %cst_26 = arith.constant dense<0.000000e+00> : vector<32xf32>
    %48 = vector.multi_reduction <add>, %47, %cst_26 [1] : vector<32x64xf32> to vector<32xf32>
    %49 = vector.shape_cast %48 : vector<32xf32> to vector<32x1xf32>
    %50 = tpu.iota {dimensions = array<i32: 1>} : vector<32x2xi32>
    %c0_i32 = arith.constant 0 : i32
    %51 = vector.broadcast %c0_i32 : i32 to vector<32x2xi32>
    %52 = arith.cmpi eq, %50, %51 : vector<32x2xi32>
    %53 = vector.shape_cast %44 : vector<32x1xf32> to vector<32x1xf32>
    %54 = vector.broadcast %53 : vector<32x1xf32> to vector<32x2xf32>
    %55 = vector.shape_cast %49 : vector<32x1xf32> to vector<32x1xf32>
    %56 = vector.broadcast %55 : vector<32x1xf32> to vector<32x2xf32>
    %57 = arith.select %52, %54, %56 : vector<32x2xi1>, vector<32x2xf32>
    %c0_27 = arith.constant 0 : index
    %c0_28 = arith.constant 0 : index
    %58 = vector.load %arg9[%c0_27, %c0_28] : memref<1x2xf32, #tpu.memory_space<vmem>>, vector<1x2xf32>
    %59 = vector.broadcast %58 : vector<1x2xf32> to vector<32x2xf32>
    %60 = arith.addf %57, %59 : vector<32x2xf32>
    %61 = math.tanh %60 : vector<32x2xf32>
    %c0_29 = arith.constant 0 : index
    %c0_30 = arith.constant 0 : index
    %62 = vector.load %arg10[%c0_29, %c0_30] : memref<32x2xf32, #tpu.memory_space<vmem>>, vector<32x2xf32>
    tpu.vector_store %arg10[%c0_29, %c0_30], %61 {strides = array<i32>} : memref<32x2xf32, #tpu.memory_space<vmem>>, vector<32x2xf32>,
    return
  }
  func.func @transform_0(%arg0: i32) -> (i32, i32) {
    %c0_i32 = arith.constant 0 : i32
    %c0_i32_0 = arith.constant 0 : i32
    return %arg0, %c0_i32 : i32, i32
  }
  func.func @transform_1(%arg0: i32) -> (i32, i32) {
    %c0_i32 = arith.constant 0 : i32
    %c0_i32_0 = arith.constant 0 : i32
    %c0_i32_1 = arith.constant 0 : i32
    return %c0_i32, %c0_i32_0 : i32, i32
  }
  func.func @transform_2(%arg0: i32) -> (i32, i32) {
    %c0_i32 = arith.constant 0 : i32
    %c0_i32_0 = arith.constant 0 : i32
    %c0_i32_1 = arith.constant 0 : i32
    return %c0_i32, %c0_i32_0 : i32, i32
  }
  func.func @transform_3(%arg0: i32) -> (i32, i32) {
    %c0_i32 = arith.constant 0 : i32
    %c0_i32_0 = arith.constant 0 : i32
    %c0_i32_1 = arith.constant 0 : i32
    return %c0_i32, %c0_i32_0 : i32, i32
  }
  func.func @transform_4(%arg0: i32) -> (i32, i32) {
    %c0_i32 = arith.constant 0 : i32
    %c0_i32_0 = arith.constant 0 : i32
    %c0_i32_1 = arith.constant 0 : i32
    return %c0_i32, %c0_i32_0 : i32, i32
  }
  func.func @transform_5(%arg0: i32) -> (i32, i32) {
    %c0_i32 = arith.constant 0 : i32
    %c0_i32_0 = arith.constant 0 : i32
    %c0_i32_1 = arith.constant 0 : i32
    return %c0_i32, %c0_i32_0 : i32, i32
  }
  func.func @transform_6(%arg0: i32) -> (i32, i32) {
    %c0_i32 = arith.constant 0 : i32
    %c0_i32_0 = arith.constant 0 : i32
    %c0_i32_1 = arith.constant 0 : i32
    return %c0_i32, %c0_i32_0 : i32, i32
  }
  func.func @transform_7(%arg0: i32) -> (i32, i32) {
    %c0_i32 = arith.constant 0 : i32
    %c0_i32_0 = arith.constant 0 : i32
    %c0_i32_1 = arith.constant 0 : i32
    return %c0_i32, %c0_i32_0 : i32, i32
  }
  func.func @transform_8(%arg0: i32) -> (i32, i32) {
    %c0_i32 = arith.constant 0 : i32
    %c0_i32_0 = arith.constant 0 : i32
    %c0_i32_1 = arith.constant 0 : i32
    return %c0_i32, %c0_i32_0 : i32, i32
  }
  func.func @transform_9(%arg0: i32) -> (i32, i32) {
    %c0_i32 = arith.constant 0 : i32
    %c0_i32_0 = arith.constant 0 : i32
    return %arg0, %c0_i32 : i32, i32
  }
}

</mosaic_0001>

<bundles_post_ra>
// kernel: tpu_custom_call.1
= control target key start
LH: loop header
LB: loop body
LE: loop exit
PB: predicated region body
PF: predicated region fallthrough
CT: control target
= control target key end

     0   :  { %s935_s30 = smov 0   ;;  %s1021_s0 = inlined_call_operand.vmem [shape: f32[64,2], index: 0, kind: input, shape index: {}]   ;;  %s1022_s1 = inlined_call_operand.vmem [shape: f32[2,16], index: 1, kind: input, shape index: {}]   ;;  %s1023_s2 = inlined_call_operand.vmem [shape: f32[1,16], index: 2, kind: input, shape index: {}]   ;;  %s1024_s3 = inlined_call_operand.vmem [shape: f32[16,32], index: 3, kind: input, shape index: {}]   ;;  %s1025_s4 = inlined_call_operand.vmem [shape: f32[1,32], index: 4, kind: input, shape index: {}]   ;;  %s1026_s5 = inlined_call_operand.vmem [shape: f32[32,64], index: 5, kind: input, shape index: {}]   ;;  %s1027_s6 = inlined_call_operand.vmem [shape: f32[1,64], index: 6, kind: input, shape index: {}]   ;;  %s1028_s7 = inlined_call_operand.vmem [shape: f32[2,64], index: 7, kind: input, shape index: {}]   ;;  %s1029_s8 = inlined_call_operand.vmem [shape: f32[1,2], index: 8, kind: input, shape index: {}]   ;;  %s1030_s9 = inlined_call_operand.vmem [shape: f32[64,2], index: 9, kind: output, shape index: {}]  }
   0x1 LB: > { %s787_s10 = sadd.s32 4294967295, %s881_s30   ;;  %p791_p0 = scmp.ge.s32.totalorder %s881_s30, 1  ;;  %s881_s30 = sphi %s935_s30, %s19_s30  }
   0x2   : > { %p288_p1 = scmp.lt.s32.totalorder %s881_s30, 3 }
   0x4   : > { %p289_p2 = pnand %p791_p0, %p288_p1 }
   0x5   : > { %s792_s11 = sshll.u32 (!%p289_p2), %s787_s10, 2 }
   0x6   : > { %292 = sbr.rel (%p289_p2) target bundleno = 726 (0x2d6), region = 56  ;;  %p325_p3 = scmp.lt.s32.totalorder (!%p289_p2), %s792_s11, 7 }
   0xb   : > { %v883_v0 = vmov 0   ;;  %s1032_s11 = smov (!%p325_p3, %s792_s11), 7  ;;  %v884_v3 = vmov 1   ;;  %v422_v5 = vld [vmem:[%s1024_s3 + $0x8] sm:$0xff]  ;;  %v421_v6 = vld [vmem:[%s1024_s3] sm:$0xff]  ;;  %vm430_vm0 = vcmask 130048  }
   0xc   : > { %864 = vset.pattern.permute.xlu1 %v883_v0  ;;  %862 = vset.pattern.permute.xlu0 %v883_v0  ;;  %s793_s12 = sshll.u32 %s1032_s11, 3  ;;  %v796_v10 = vld [vmem:[%s1022_s1] ss:$0 sm:$0xff]  ;;  %v797_v11 = vld [vmem:[%s1022_s1 + $0x1] ss:$0 sm:$0xff]  ;;  %v543_v43 = vld [vmem:[%s1026_s5 + $0x18] sm:$0xff] }
   0xd   : > { %s328_s15 = scalar_lea.vmem %s1021_s0, %s793_s12  ;;  %828 = vmatprep.subr.mxu0 %v422_v5  ;;  %v798_v18 = vld [vmem:[%s1023_s2] ss:$0 sm:$0xff]  ;;  %838 = vmatprep.subr.mxu1 %v543_v43  ;;  %v542_v44 = vld [vmem:[%s1026_s5 + $0x10] sm:$0xff]  ;;  %v541_v45 = vld [vmem:[%s1026_s5 + $0x8] sm:$0xff]  ;;  %vm551_vm7 = vcmask 261120   ;;  %vm670_vm12 = vcmask 523264   ;;  %s334_s28 = scalar_lea.vmem %s1030_s9, %s793_s12 }
   0xe   : > { %v337_v1 = vld [vmem:[%s328_s15 + $0x8] sm:$0xff]  ;;  %v336_v2 = vld [vmem:[%s328_s15] sm:$0xff]  ;;  %v338_v4 = vld [vmem:[%s328_s15 + $0x10] sm:$0xff]  ;;  %829 = vmatpush3.msra.mxu0 %v422_v5  ;;  %839 = vmatpush3.msra.mxu1 %v543_v43 }
   0xf   : > { %348 = vperm.xlu1 %864, %v337_v1   ;;  %343 = vperm.xlu0 %862, %v336_v2   ;;  %v339_v7 = vld [vmem:[%s328_s15 + $0x18] sm:$0xff]  ;;  %v540_v46 = vld [vmem:[%s1026_s5] sm:$0xff] }
  0x10   : > { %830 = vmatprep.subr.mxu0 %v421_v6  ;;  %840 = vmatprep.subr.mxu1 %v542_v44  ;;  %v799_v47 = vld [vmem:[%s1025_s4] ss:$0 sm:$0xff] }
  0x11   : > { %831 = vmatpush3.msra.mxu0 %v421_v6  ;;  %841 = vmatpush3.msra.mxu1 %v542_v44 }
  0x12   : > { %842 = vmatprep.subr.mxu1 %v541_v45 }
  0x13   : > { %865 = vset.pattern.permute.xlu1 %v884_v3  ;;  %863 = vset.pattern.permute.xlu0 %v884_v3 }
  0x14   : > { %375 = vperm.xlu1 %865, %v337_v1   ;;  %371 = vperm.xlu0 %863, %v336_v2  }
  0x15   : > { %843 = vmatpush3.msra.mxu1 %v541_v45 }
  0x16   : > { %844 = vmatprep.subr.mxu1 %v540_v46 }
  0x17   : > { %845 = vmatpush3.msra.mxu1 %v540_v46 }
  0x18   : > { %866 = vset.pattern.permute.xlu1 %v883_v0  ;;  %379 = vperm.xlu0 %863, %v338_v4   ;;  %v804_v0 = vld [vmem:[%s1027_s6] ss:$0 sm:$0xff] }
  0x19   : > { %353 = vperm.xlu1 %866, %v338_v4   ;;  %v810_v4 = vld [vmem:[%s1028_s7 + $0x1] ss:$0 sm:$0xff] }
  0x1c   : > { %383 = vperm.xlu0 %863, %v339_v7  }
  0x1d   : > { %358 = vperm.xlu1 %866, %v339_v7   ;;  %v809_v7 = vld [vmem:[%s1028_s7] ss:$0 sm:$0xff] }
  0x8a   : > { %v349_v8 = vpop.permute.xlu1 %348  ;;  %v344_v9 = vpop.permute.xlu0 %343 }
  0x8b   : > { %v366_v14 = vmul.f32 %v796_v10, %v349_v8  ;;  %v365_v15 = vmul.f32 %v796_v10, %v344_v9 }
  0x8f   : > { %v376_v12 = vpop.permute.xlu1 %375  ;;  %v372_v13 = vpop.permute.xlu0 %371 }
  0x90   : > { %v391_v16 = vmul.f32 %v797_v11, %v376_v12  ;;  %v390_v17 = vmul.f32 %v797_v11, %v372_v13 }
  0x92   : > { %v395_v19 = vadd.f32 %v391_v16, %v366_v14  ;;  %v394_v20 = vadd.f32 %v390_v17, %v365_v15 }
  0x93   : > { %v380_v21 = vpop.permute.xlu0 %379 }
  0x94   : > { %v406_v22 = vadd.f32 %v798_v18, %v395_v19  ;;  %v405_v23 = vadd.f32 %v798_v18, %v394_v20  ;;  %v392_v24 = vmul.f32 %v797_v11, %v380_v21  ;;  %v354_v25 = vpop.permute.xlu1 %353 }
  0x95   : > { %v367_v26 = vmul.f32 %v796_v10, %v354_v25 }
  0x96   : > { %vm409_vm1 = vcmp.gt.f32.partialorder %v405_v23, 0.0  ;;  %v413_v27 = vmul.f32 0.001, %v405_v23  ;;  %vm410_vm2 = vcmp.gt.f32.partialorder %v406_v22, 0.0  ;;  %v414_v28 = vmul.f32 0.001, %v406_v22 }
  0x97   : > { %v396_v29 = vadd.f32 %v392_v24, %v367_v26  ;;  %v384_v30 = vpop.permute.xlu0 %383 }
  0x98   : > { %v393_v31 = vmul.f32 %v797_v11, %v384_v30  ;;  %v359_v32 = vpop.permute.xlu1 %358  ;;  %v417_v33 = vsel %vm409_vm1, %v405_v23, %v413_v27  ;;  %v418_v34 = vsel %vm410_vm2, %v406_v22, %v414_v28 }
  0x99   : > { %v407_v35 = vadd.f32 %v798_v18, %v396_v29  ;;  %v368_v36 = vmul.f32 %v796_v10, %v359_v32  ;;  %832 = vmatprep.mubr.msk.f32.mxu0 %vm430_vm0, %v417_v33 }
  0x9a   : > { %833 = vmatmul.mubr.msk.f32.vlgmr.msra.gmra.mxu0 %vm430_vm0, %v418_v34 }
  0x9b   : > { %v397_v37 = vadd.f32 %v393_v31, %v368_v36  ;;  %vm411_vm3 = vcmp.gt.f32.partialorder %v407_v35, 0.0  ;;  %v415_v38 = vmul.f32 0.001, %v407_v35 }
  0x9d   : > { %v408_v39 = vadd.f32 %v798_v18, %v397_v37  ;;  %v419_v40 = vsel %vm411_vm3, %v407_v35, %v415_v38  ;;  %v704_v35 = vlaneseq }
  0x9e   : > { %835 = vmatprep.mubr.msk.f32.mxu0 %vm430_vm0, %v419_v40 }
  0x9f   : > { %vm412_vm4 = vcmp.gt.f32.partialorder %v408_v39, 0.0  ;;  %v416_v41 = vmul.f32 0.001, %v408_v39  ;;  %v705_v36 = vand.u32 127, %v704_v35 }
  0xa1   : > { %v420_v42 = vsel %vm412_vm4, %v408_v39, %v416_v41  ;;  %vm706_vm15 = vcmp.eq.s32.totalorder %v705_v36, 0  ;;  %v811_v39 = vld [vmem:[%s1029_s8] ss:$0 sm:$0xff] }
  0xa2   : > { %836 = vmatmul.mubr.msk.f32.gmra.mxu0 %vm430_vm0, %v420_v42  ;;  %vm726_vm0 = vcmask 15360  }
 0x15a   : > { %v834_v48 = vpop.f32.mrf.mxu0 }
 0x15b   : > { %v515_v49 = vadd.f32 %v834_v48, %v799_v47 }
 0x15c   : > { %v509_v50 = vpop.f32.mrf.mxu0 }
 0x15d   : > { %v510_v51 = vadd.f32 %v799_v47, %v509_v50  ;;  %v533_v52 = vmul.f32 0.001, %v515_v49  ;;  %vm529_vm5 = vcmp.gt.f32.partialorder %v515_v49, 0.0 }
 0x15f   : > { %vm528_vm6 = vcmp.gt.f32.partialorder %v510_v51, 0.0  ;;  %v532_v53 = vmul.f32 0.001, %v510_v51  ;;  %v537_v56 = vsel %vm529_vm5, %v515_v49, %v533_v52 }
 0x161   : > { %v536_v54 = vsel %vm528_vm6, %v510_v51, %v532_v53 }
 0x162   : > { %v837_v55 = vpop.f32.mrf.mxu0  ;;  %846 = vmatprep.mubr.msk.f32.mxu1 %vm551_vm7, %v536_v54 }
 0x163   : > { %v525_v57 = vadd.f32 %v837_v55, %v799_v47  ;;  %847 = vmatmul.mubr.msk.f32.vlgmr.msra.gmra.mxu1 %vm551_vm7, %v537_v56 }
 0x164   : > { %v519_v58 = vpop.f32.mrf.mxu0 }
 0x165   : > { %v520_v59 = vadd.f32 %v799_v47, %v519_v58  ;;  %v535_v60 = vmul.f32 0.001, %v525_v57  ;;  %vm531_vm8 = vcmp.gt.f32.partialorder %v525_v57, 0.0 }
 0x167   : > { %vm530_vm9 = vcmp.gt.f32.partialorder %v520_v59, 0.0  ;;  %v534_v61 = vmul.f32 0.001, %v520_v59  ;;  %v539_v63 = vsel %vm531_vm8, %v525_v57, %v535_v60 }
 0x169   : > { %v538_v62 = vsel %vm530_vm9, %v520_v59, %v534_v61 }
 0x16a   : > { %849 = vmatprep.mubr.msk.f32.mxu1 %vm551_vm7, %v538_v62 }
 0x16b   : > { %850 = vmatmul.mubr.msk.f32.gmra.mxu1 %vm551_vm7, %v539_v63 }
 0x223   : > { %v848_v1 = vpop.f32.mrf.mxu1 }
 0x224   : > { %v636_v2 = vadd.f32 %v848_v1, %v804_v0 }
 0x225   : > { %v630_v3 = vpop.f32.mrf.mxu1 }
 0x226   : > { %vm650_vm10 = vcmp.gt.f32.partialorder %v636_v2, 0.0  ;;  %v654_v5 = vmul.f32 0.001, %v636_v2  ;;  %v631_v6 = vadd.f32 %v804_v0, %v630_v3 }
 0x228   : > { %vm649_vm11 = vcmp.gt.f32.partialorder %v631_v6, 0.0  ;;  %v653_v8 = vmul.f32 0.001, %v631_v6  ;;  %v658_v9 = vsel %vm650_vm10, %v636_v2, %v654_v5 }
 0x229   : > { %v689_v10 = vmul.f32 %v810_v4, %v658_v9  ;;  %v667_v11 = vmul.f32 %v809_v7, %v658_v9 }
 0x22a   : > { %v657_v12 = vsel %vm649_vm11, %v631_v6, %v653_v8 }
 0x22b   : > { %v851_v13 = vpop.f32.mrf.mxu1  ;;  %v695_v14 = vsel %vm670_vm12, %v689_v10, 0.0  ;;  %v674_v15 = vsel %vm670_vm12, %v667_v11, 0.0  ;;  %v688_v16 = vmul.f32 %v810_v4, %v657_v12  ;;  %v666_v17 = vmul.f32 %v809_v7, %v657_v12 }
 0x22c   : > { %v646_v18 = vadd.f32 %v851_v13, %v804_v0  ;;  %696 = vadd.xlane.f32.xlu1 %v695_v14  ;;  %675 = vadd.xlane.f32.xlu0 %v674_v15 }
 0x22d   : > { %v640_v19 = vpop.f32.mrf.mxu1  ;;  %v692_v22 = vsel %vm670_vm12, %v688_v16, 0.0  ;;  %v671_v23 = vsel %vm670_vm12, %v666_v17, 0.0 }
 0x22e   : > { %v656_v20 = vmul.f32 0.001, %v646_v18  ;;  %v641_v21 = vadd.f32 %v804_v0, %v640_v19  ;;  %vm652_vm13 = vcmp.gt.f32.partialorder %v646_v18, 0.0 }
 0x230   : > { %vm651_vm14 = vcmp.gt.f32.partialorder %v641_v21, 0.0  ;;  %v655_v24 = vmul.f32 0.001, %v641_v21  ;;  %693 = vadd.xlane.f32.xlu0 %v692_v22  ;;  %672 = vadd.xlane.f32.xlu1 %v671_v23  ;;  %v660_v26 = vsel %vm652_vm13, %v646_v18, %v656_v20 }
 0x231   : > { %v691_v31 = vmul.f32 %v810_v4, %v660_v26  ;;  %v669_v32 = vmul.f32 %v809_v7, %v660_v26 }
 0x232   : > { %v659_v25 = vsel %vm651_vm14, %v641_v21, %v655_v24 }
 0x233   : > { %v690_v27 = vmul.f32 %v810_v4, %v659_v25  ;;  %v668_v28 = vmul.f32 %v809_v7, %v659_v25  ;;  %v701_v33 = vsel %vm670_vm12, %v691_v31, 0.0  ;;  %v680_v34 = vsel %vm670_vm12, %v669_v32, 0.0 }
 0x235   : > { %v698_v29 = vsel %vm670_vm12, %v690_v27, 0.0  ;;  %v677_v30 = vsel %vm670_vm12, %v668_v28, 0.0 }
 0x236   : > { %699 = vadd.xlane.f32.xlu1 %v698_v29  ;;  %678 = vadd.xlane.f32.xlu0 %v677_v30 }
 0x23a   : > { %702 = vadd.xlane.f32.xlu1 %v701_v33  ;;  %681 = vadd.xlane.f32.xlu0 %v680_v34 }
 0x2b5   : > { %v697_v37 = vpop.xlane.xlu1 %696  ;;  %v676_v38 = vpop.xlane.xlu0 %675 }
 0x2b6   : > { %v708_v40 = vsel %vm706_vm15, %v676_v38, %v697_v37 }
 0x2b7   : > { %v719_v43 = vadd.f32 %v811_v39, %v708_v40 }
 0x2b9   : > { %v673_v41 = vpop.xlane.xlu1 %672  ;;  %v694_v42 = vpop.xlane.xlu0 %693 }
 0x2ba   : > { %v707_v44 = vsel %vm706_vm15, %v673_v41, %v694_v42 }
 0x2bb   : > { %v718_v45 = vadd.f32 %v811_v39, %v707_v44 }
 0x2bd   : > { %867 = vtanh.f32 %v718_v45 }
 0x2be   : > { %869 = vtanh.f32 %v719_v43 }
 0x2bf   : > { %v700_v46 = vpop.xlane.xlu1 %699  ;;  %v679_v47 = vpop.xlane.xlu0 %678 }
 0x2c0   : > { %v709_v48 = vsel %vm706_vm15, %v679_v47, %v700_v46 }
 0x2c1   : > { %v720_v49 = vadd.f32 %v811_v39, %v709_v48 }
 0x2c3   : > { %871 = vtanh.f32 %v720_v49  ;;  %v703_v50 = vpop.xlane.xlu1 %702  ;;  %v682_v51 = vpop.xlane.xlu0 %681 }
 0x2c4   : > { %v710_v52 = vsel %vm706_vm15, %v682_v51, %v703_v50 }
 0x2c5   : > { %v721_v53 = vadd.f32 %v811_v39, %v710_v52 }
 0x2c7   : > { %873 = vtanh.f32 %v721_v53 }
 0x2ca   : > { %v868_v54 = vpop.eup %867 }
 0x2cb   : > { %v870_v55 = vpop.eup %869  ;;  %727 = vst.msk [vmem:[%s334_s28] sm:$0xff] %vm726_vm0, %v868_v54 }
 0x2cc   : > { %728 = vst.msk [vmem:[%s334_s28 + $0x8] sm:$0xff] %vm726_vm0, %v870_v55 }
 0x2d0   : > { %v872_v56 = vpop.eup %871 }
 0x2d1   : > { %729 = vst.msk [vmem:[%s334_s28 + $0x10] sm:$0xff] %vm726_vm0, %v872_v56 }
 0x2d4   : > { %v874_v57 = vpop.eup %873 }
 0x2d5   : > { %730 = vst.msk [vmem:[%s334_s28 + $0x18] sm:$0xff] %vm726_vm0, %v874_v57 }
 0x2d6 PF: > { %s19_s30 = sadd.s32 1, %s881_s30  }
 0x2d7   : > { %p16_p4 = scmp.ge.s32.totalorder %s19_s30, 4  }
 0x2d9   :  { %18 = sbr.rel (!%p16_p4) target bundleno = 1 (0x1), region = 86 }

</bundles_post_ra>
